<compile_context>
chip_gen: v6e
topology: v6e:2x2x1
jax: 0.10.0
libtpu: 0.0.40
codegen_flags: <defaults>
</compile_context>

<pallas_src>
import functools
import math

import jax
import jax.numpy as jnp
import numpy as np
from jax.experimental import pallas as pl
from jax.experimental.pallas import tpu as pltpu

_LANE = 128
_SUBLANE = 8
_MAX_TILE_ROWS = 1024  # (1024, 128) f32 block = 512 KiB per buffer -> fits all gens


def _round_up(x, m):
    return (x + m - 1) // m * m


def _hard_concrete_kernel(log_alpha_ref, u_ref, y_ref, *, tau, gamma, zeta):
    # Blocks are (tile_rows, 128): lane-dense, full sublane utilisation.
    u = jnp.maximum(u_ref[...], jnp.float32(1e-7))
    # Fused logistic noise: log(u) - log(1-u) == log(u / (1-u))  -> 1 EUP log.
    noise = jnp.log(u / (jnp.float32(1.0) - u))
    logits = log_alpha_ref[...] + noise
    if tau != 1.0:                      # static Python arg -> dead code if tau == 1
        logits = logits * jnp.float32(1.0 / tau)
    y_soft = jax.nn.sigmoid(logits)
    y = y_soft * jnp.float32(zeta - gamma) + jnp.float32(gamma)
    y_ref[...] = jnp.clip(y, jnp.float32(0.0), jnp.float32(1.0))


def louizos_gumbel_sigmoid_forward(log_alpha, bs, key, *, tau=1.0, gamma=-0.1,
                                   zeta=1.1, freeze=False, fixed_mask=None):
    """Pallas implementation of LouizosGumbelSigmoid.forward(bs)."""
    shape = log_alpha.shape
    if freeze:
        # Frozen path: plain broadcast, no randomness (glue, not a hot path).
        return jnp.broadcast_to(fixed_mask[None].astype(jnp.float32), (bs,) + shape)

    n = int(np.prod(shape))

    # Repack to lane-dense (rows, 128) layout; pad so tiles divide evenly.
    rows = -(-n // _LANE)                       # cdiv
    if rows <= _MAX_TILE_ROWS:
        tile_rows = _round_up(max(rows, 1), _SUBLANE)
        rows_pad = tile_rows
    else:
        tile_rows = _MAX_TILE_ROWS
        rows_pad = _round_up(rows, tile_rows)
    n_pad = rows_pad * _LANE
    n_tiles = rows_pad // tile_rows

    la = log_alpha.reshape(-1).astype(jnp.float32)
    la = jnp.pad(la, (0, n_pad - n)).reshape(rows_pad, _LANE)

    # Uniform noise drawn in the wrapper (no interpret-incompatible PRNG prims).
    u = jax.random.uniform(key, (bs, n), dtype=jnp.float32)
    u = jnp.pad(u, ((0, 0), (0, n_pad - n)), constant_values=0.5)
    u = u.reshape(bs, rows_pad, _LANE)

    kernel = functools.partial(_hard_concrete_kernel, tau=float(tau),
                               gamma=float(gamma), zeta=float(zeta))

    out = pl.pallas_call(
        kernel,
        out_shape=jax.ShapeDtypeStruct((bs, rows_pad, _LANE), jnp.float32),
        # batch innermost: log_alpha's block index is constant across it, so
        # its tile stays resident in VMEM (no re-DMA per batch step).
        grid=(n_tiles, bs),
        in_specs=[
            pl.BlockSpec((tile_rows, _LANE), lambda t, b: (t, 0)),          # log_alpha
            pl.BlockSpec((None, tile_rows, _LANE), lambda t, b: (b, t, 0)),  # uniforms
        ],
        out_specs=pl.BlockSpec((None, tile_rows, _LANE), lambda t, b: (b, t, 0)),
        compiler_params=pltpu.CompilerParams(
            dimension_semantics=("parallel", "parallel")),
        cost_estimate=pl.CostEstimate(
            flops=8 * bs * n_pad,
            transcendentals=2 * bs * n_pad,          # 1 log + 1 exp per element
            bytes_accessed=4 * (2 * bs * n_pad + n_pad)),
    )(la, u)

    out = out.reshape(bs, n_pad)[:, :n]
    return out.reshape((bs,) + shape)


# TODO(synk): backward (straight-through / hard-concrete gradient) would need a
# jax.custom_vjp around this forward; only the forward pass is implemented.


if __name__ == "__main__":
    # Module shape (C, H, W) = (4, 16, 16), batch size 2, default tau/gamma/zeta.
    C, H, W = 4, 16, 16
    bs = 2
    tau, gamma, zeta = 1.0, -0.1, 1.1

    # reset_parameters(): log_alpha = tau * (log(1 - gamma) - log(zeta - 1))
    init = tau * (math.log(1.0 - gamma) - math.log(zeta - 1.0))
    log_alpha = jnp.full((C, H, W), init, dtype=jnp.float32)

    key = jax.random.PRNGKey(0)

    y = louizos_gumbel_sigmoid_forward(log_alpha, bs, key,
                                       tau=tau, gamma=gamma, zeta=zeta)
    y = jax.block_until_ready(y)

    # Pure-JAX reference using the identical uniform draws.
    n = C * H * W
    u = jax.random.uniform(key, (bs, n), dtype=jnp.float32)
    u_c = jnp.maximum(u, 1e-7)
    noise = jnp.log(u_c) - jnp.log(1.0 - u_c)
    y_ref = jax.nn.sigmoid((log_alpha.reshape(-1)[None] + noise) / tau)
    y_ref = jnp.clip(y_ref * (zeta - gamma) + gamma, 0.0, 1.0)
    y_ref = np.asarray(y_ref).reshape(bs, C, H, W)

    assert y.shape == (bs, C, H, W), y.shape
    assert y.dtype == jnp.float32
    vals = np.asarray(y)
    np.testing.assert_allclose(vals, y_ref, rtol=1e-5, atol=1e-5)
    assert vals.min() >= 0.0 and vals.max() <= 1.0
    # With the default init, P(mask != 0) ~ 0.99 -> gate values are mostly large.
    assert vals.mean() > 0.5

    # Frozen path (plain JAX broadcast).
    y_frozen = louizos_gumbel_sigmoid_forward(
        log_alpha, bs, key, tau=tau, gamma=gamma, zeta=zeta,
        freeze=True, fixed_mask=jnp.ones((C, H, W), jnp.float32))
    assert y_frozen.shape == (bs, C, H, W)
    assert np.all(np.asarray(y_frozen) == 1.0)

    print("KERNEL_OK")
</pallas_src>

<mosaic_0001>
module attributes {stable_mosaic.version = 11 : i64} {
  func.func @_hard_concrete_kernel(%arg0: i32, %arg1: i32, %arg2: memref<8x128xf32, #tpu.memory_space<vmem>>, %arg3: memref<1x8x128xf32, #tpu.memory_space<vmem>>, %arg4: memref<1x8x128xf32, #tpu.memory_space<vmem>>) attributes {dimension_semantics = [#tpu.dimension_semantics<parallel>, #tpu.dimension_semantics<parallel>], iteration_bounds = array<i64: 1, 2>, scalar_prefetch = 0 : i64, scratch_operands = 0 : i64, tpu.core_type = #tpu.core_type<tc>, window_params = [{transform_indices = @transform_0, window_bounds = array<i64: 8, 128>}, {transform_indices = @transform_1, window_bounds = array<i64: 1, 8, 128>}, {transform_indices = @transform_2, window_bounds = array<i64: 1, 8, 128>}]} {
    %c0 = arith.constant 0 : index
    %c0_0 = arith.constant 0 : index
    %c0_1 = arith.constant 0 : index
    %0 = vector.load %arg3[%c0, %c0_0, %c0_1] : memref<1x8x128xf32, #tpu.memory_space<vmem>>, vector<1x8x128xf32>
    %1 = vector.shape_cast %0 : vector<1x8x128xf32> to vector<8x128xf32>
    %cst = arith.constant 1.000000e-07 : f32
    %2 = vector.broadcast %cst : f32 to vector<8x128xf32>
    %3 = arith.maximumf %1, %2 : vector<8x128xf32>
    %cst_2 = arith.constant 1.000000e+00 : f32
    %4 = vector.broadcast %cst_2 : f32 to vector<8x128xf32>
    %5 = arith.subf %4, %3 : vector<8x128xf32>
    %6 = arith.divf %3, %5 : vector<8x128xf32>
    %7 = math.log %6 : vector<8x128xf32>
    %c0_3 = arith.constant 0 : index
    %c0_4 = arith.constant 0 : index
    %8 = vector.load %arg2[%c0_3, %c0_4] : memref<8x128xf32, #tpu.memory_space<vmem>>, vector<8x128xf32>
    %9 = arith.addf %8, %7 : vector<8x128xf32>
    %10 = arith.negf %9 : vector<8x128xf32>
    %11 = math.exp %10 : vector<8x128xf32>
    %cst_5 = arith.constant 1.000000e+00 : f32
    %12 = vector.broadcast %cst_5 : f32 to vector<8x128xf32>
    %13 = arith.addf %12, %11 : vector<8x128xf32>
    %14 = arith.divf %12, %13 : vector<8x128xf32>
    %cst_6 = arith.constant 1.200000e+00 : f32
    %15 = vector.broadcast %cst_6 : f32 to vector<8x128xf32>
    %16 = arith.mulf %14, %15 : vector<8x128xf32>
    %cst_7 = arith.constant -1.000000e-01 : f32
    %17 = vector.broadcast %cst_7 : f32 to vector<8x128xf32>
    %18 = arith.addf %16, %17 : vector<8x128xf32>
    %cst_8 = arith.constant 0.000000e+00 : f32
    %cst_9 = arith.constant 1.000000e+00 : f32
    %19 = vector.broadcast %cst_8 : f32 to vector<8x128xf32>
    %20 = arith.maximumf %19, %18 : vector<8x128xf32>
    %21 = vector.broadcast %cst_9 : f32 to vector<8x128xf32>
    %22 = arith.minimumf %21, %20 : vector<8x128xf32>
    %c0_10 = arith.constant 0 : index
    %c0_11 = arith.constant 0 : index
    %c0_12 = arith.constant 0 : index
    %23 = vector.load %arg4[%c0_10, %c0_11, %c0_12] : memref<1x8x128xf32, #tpu.memory_space<vmem>>, vector<1x8x128xf32>
    %24 = vector.shape_cast %23 : vector<1x8x128xf32> to vector<8x128xf32>
    %25 = vector.shape_cast %22 : vector<8x128xf32> to vector<1x8x128xf32>
    tpu.vector_store %arg4[%c0_10, %c0_11, %c0_12], %25 {strides = array<i32>} : memref<1x8x128xf32, #tpu.memory_space<vmem>>, vector<1x8x128xf32>,
    return
  }
  func.func @transform_0(%arg0: i32, %arg1: i32) -> (i32, i32) {
    %c0_i32 = arith.constant 0 : i32
    %c0_i32_0 = arith.constant 0 : i32
    return %arg0, %c0_i32 : i32, i32
  }
  func.func @transform_1(%arg0: i32, %arg1: i32) -> (i32, i32, i32) {
    %c0_i32 = arith.constant 0 : i32
    %c0_i32_0 = arith.constant 0 : i32
    return %arg1, %arg0, %c0_i32 : i32, i32, i32
  }
  func.func @transform_2(%arg0: i32, %arg1: i32) -> (i32, i32, i32) {
    %c0_i32 = arith.constant 0 : i32
    %c0_i32_0 = arith.constant 0 : i32
    return %arg1, %arg0, %c0_i32 : i32, i32, i32
  }
}

</mosaic_0001>

<bundles_post_ra>
// kernel: tpu_custom_call.1
= control target key start
LH: loop header
LB: loop body
LE: loop exit
PB: predicated region body
PF: predicated region fallthrough
CT: control target
= control target key end

     0   :  { %7 = vsyncpa [#allocation3], 0  ;;  %s741_s0 = inlined_call_operand.hbm [shape: f32[8,128], index: 0, kind: input, shape index: {}]   ;;  %s742_s1 = inlined_call_operand.hbm [shape: f32[2,8,128], index: 1, kind: input, shape index: {}]   ;;  %s743_s2 = inlined_call_operand.hbm [shape: f32[2,8,128], index: 2, kind: output, shape index: {}]  }
   0x1   :  { %8 = vsyncpa [#allocation6], 0 }
   0x2   :  { %10 = vsyncpa [#allocation6 + $0x1], 0 }
   0x3   :  { %11 = vsyncpa [#allocation4], 0 }
   0x4   :  { %13 = vsyncpa [#allocation4 + $0x1], 0  ;;  %s580_s9 = smov 0   ;;  %s582_s10 = smov 0  }
   0x5   :  { %s584_s11 = smov 0   ;;  %s586_s12 = smov 0  }
   0x6   :  { %s588_s13 = smov 0   ;;  %s590_s14 = smov 0  }
   0x7 LB: > { %s325_s15 = sadd.s32 4294967295, %s560_s14   ;;  %s326_s16 = sadd.s32 4294967294, %s560_s14   ;;  %s560_s14 = sphi %s590_s14, %s19_s14   ;;  %s556_s13 = sphi %s588_s13, %s760_s13   ;;  %s552_s12 = sphi %s586_s12, %s759_s12   ;;  %s548_s11 = sphi %s584_s11, %s758_s11   ;;  %s544_s10 = sphi %s582_s10, %s757_s10   ;;  %s540_s9 = sphi %s580_s9, %s756_s9  }
   0x8   : > { %p79_p0 = scmp.ne.s32.totalorder %s544_s10, %s540_s9  ;;  %p614_p1 = scmp.eq.s32.totalorder %s325_s15, 0 }
   0x9   : > { %p618_p2 = scmp.eq.s32.totalorder %s325_s15, 1  ;;  %p111_p3 = scmp.eq.s32.totalorder %s326_s16, 1 }
   0xa   : > { %p624_p4 = por %p614_p1, %p79_p0  ;;  %p327_p5 = scmp.ge.s32.totalorder %s560_s14, 1 }
   0xb   : > { %p629_p6 = por %p111_p3, %p79_p0  ;;  %p118_p7 = scmp.lt.s32.totalorder %s560_s14, 3 }
   0xc   : > { %s747_s19 = scalar_select %p624_p4, 1, 0 }
   0xd   : > { %s748_s20 = scalar_select %p629_p6, 1, 0 }
   0xe   : > { %p634_p8 = pnand %p327_p5, %p118_p7  ;;  %s562_s22 = smov [#allocation2]  }
   0xf   : > { %s133_s23 = sshll.u32 %s562_s22, 4  ;;  %s28_s25 = sadd.s32 1, %s556_s13  ;;  %s134_s23 = int_to_ptr.vmem [resolvable:$true] %s133_s23 }
  0x10   : > { %p349_p10 = pneg %p634_p8  ;;  %s66_s26 = sadd.s32 1, %s548_s11 }
  0x11   : > { %p29_p12 = scmp.ge.s32.totalorder %s28_s25, 2  ;;  %s433_s27 = scalar_lea.vmem %s134_s23, 128 }
  0x12   : > { %p643_p11 = pnand %p349_p10, %p614_p1  ;;  %p434_p0 = scmp.ne.s32.totalorder %s134_s23, %s433_s27 }
  0x13   : > { %p441_p7 = scmp.lt.s32.totalorder %s134_s23, %s134_s23  ;;  %p442_p6 = scmp.lt.s32.totalorder %s433_s27, %s433_s27 }
  0x14   : > { %p424_p13 = pneg %p643_p11 }
  0x15   : > { %p443_p9 = por %p442_p6, %p441_p7 }
  0x16   : > { %p436_p3 = pnand %p434_p0, %p424_p13 }
  0x18   : > { %p437_p5 = pneg %p436_p3 }
  0x1a   : > { %p444_p4 = pnand %p443_p9, %p437_p5 }
  0x1c   : > { %447 = shalt.err (!%p444_p4)
}
  0x1d   : > { %352 = dma.hbm_to_vmem [thread:$0]  (!%p643_p11), %s741_s0, 128, %s134_s23, [#allocation3]  }
  0x1e   : > { %s762_s25 = smov (%p29_p12, %s28_s25), 0  ;;  %p73_p6 = scmp.ne.s32.totalorder %s548_s11, %s544_s10 }
  0x1f   : > { %p74_p4 = scmp.eq.s32.totalorder %s560_s14, 0  ;;  %s61_s30 = ssub.s32 %s556_s13, %s762_s25 }
  0x20   : > { %p362_p9 = scmp.lt.s32.totalorder %s560_s14, 2  ;;  %p64_p10 = scmp.eq.s32.totalorder %s61_s30, 0 }
  0x21   : > { %p75_p13 = por %p74_p4, %p73_p6  ;;  %p666_p0 = por %p618_p2, %p73_p6 }
  0x22   : > { %s144_s4 = sand.u32 1, %s548_s11   ;;  %s331_s7 = sshll.u32 %s556_s13, 7 }
  0x23   : > { %s672_s5 = scalar_select %p64_p10, %s548_s11, %s66_s26  }
  0x24   : > { %s330_s6 = sshll.u32 %s144_s4, 3  ;;  %s154_s16 = scalar_lea.hbm %s742_s1, %s331_s7 }
  0x25   : > { %s148_s22 = scalar_lea.vmem [#allocation5], %s330_s6  ;;  %p678_p11 = pnand %p362_p9, %p75_p13 }
  0x26   : > { %s156_s23 = sshll.u32 %s148_s22, 4  ;;  %s145_s18 = scalar_lea.sflag [#allocation6], %s144_s4  ;;  %s157_s23 = int_to_ptr.vmem [resolvable:$true] %s156_s23 }
  0x27   : > { %p450_p2 = pneg %p678_p11  ;;  %s461_s27 = scalar_lea.vmem %s157_s23, 128 }
  0x28   : > { %p462_p12 = scmp.ne.s32.totalorder %s157_s23, %s461_s27  ;;  %s563_s26 = smov [#allocation5]  }
  0x29   : > { %s466_s28 = sshll.u32 %s563_s26, 4  ;;  %s467_s28 = int_to_ptr.vmem [resolvable:$false] %s466_s28 }
  0x2a   : > { %p464_p3 = pnand %p462_p12, %p450_p2  ;;  %s468_s29 = scalar_lea.vmem %s467_s28, 256 }
  0x2b   : > { %p469_p7 = scmp.lt.s32.totalorder %s157_s23, %s467_s28  ;;  %p470_p6 = scmp.lt.s32.totalorder %s468_s29, %s461_s27 }
  0x2c   : > { %p465_p5 = pneg %p464_p3 }
  0x2d   : > { %p471_p4 = por %p470_p6, %p469_p7 }
  0x2f   : > { %p472_p10 = pnand %p471_p4, %p465_p5 }
  0x31   : > { %475 = shalt.err (!%p472_p10)
}
  0x32   : > { %356 = dma.hbm_to_vmem [thread:$0]  (!%p678_p11), %s154_s16, 128, %s157_s23, %s145_s18  }
  0x33   : > { %165 = sbr.rel (%p634_p8) target bundleno = 153 (0x99), region = 28 }
  0x38   : > { %527 = dma.done.wait (%p614_p1), [#allocation3], 128  }
  0x39   : > { %529 = vsyncadd (%p614_p1), [#allocation3], 4294967168  ;;  %s693_s30 = sand.u32 1, %s544_s10   ;;  %p753_p9 = scmp.ne.s32.totalorder %s747_s19, 0 }
  0x3a   : > { %s334_s4 = sshll.u32 %s693_s30, 3  ;;  %s172_s6 = scalar_lea.sflag [#allocation6], %s693_s30 }
  0x3b   : > { %s175_s7 = scalar_lea.vmem [#allocation5], %s334_s4 }
  0x3c   : > { %531 = dma.done.wait (%p753_p9), %s172_s6, 128  }
  0x3d   : > { %533 = vsyncadd (%p753_p9), %s172_s6, 4294967168  ;;  %v196_v0 = vld [vmem:[%s175_s7] sm:$0xff]  ;;  %v203_v6 = vld [vmem:[#allocation2] sm:$0xff]  ;;  %s195_s17 = scalar_lea.vmem [#allocation7], %s334_s4  ;;  %s338_s21 = sshll.u32 %s552_s12, 7 }
  0x3e   : > { %v197_v1 = vmax.f32 %v196_v0, 1e-07  ;;  %s231_s19 = sshll.u32 %s195_s17, 4  ;;  %s229_s16 = scalar_lea.hbm %s743_s2, %s338_s21  ;;  %s232_s19 = int_to_ptr.vmem [resolvable:$true] %s231_s19 }
  0x3f   : > { %s217_s22 = scalar_lea.sflag [#allocation4], %s693_s30  ;;  %s476_s23 = scalar_lea.vmem %s232_s19, 128 }
  0x40   : > { %v198_v2 = vsub.f32 1.0, %v197_v1  ;;  %p477_p1 = scmp.ne.s32.totalorder %s232_s19, %s476_s23  ;;  %s564_s24 = smov [#allocation7]  }
  0x41   : > { %s480_s18 = sshll.u32 %s564_s24, 4  ;;  %s481_s18 = int_to_ptr.vmem [resolvable:$false] %s480_s18 }
  0x42   : > { %414 = vrcp.f32 %v198_v2  ;;  %p478_p8 = pnand %p477_p1, %p666_p0  ;;  %s482_s27 = scalar_lea.vmem %s481_s18, 256 }
  0x43   : > { %p483_p11 = scmp.lt.s32.totalorder %s232_s19, %s481_s18  ;;  %p484_p2 = scmp.lt.s32.totalorder %s482_s27, %s476_s23 }
  0x44   : > { %p479_p13 = pneg %p478_p8 }
  0x45   : > { %p485_p12 = por %p484_p2, %p483_p11 }
  0x47   : > { %p486_p3 = pnand %p485_p12, %p479_p13 }
  0x4f   : > { %v415_v3 = vpop.eup %414 }
  0x50   : > { %v200_v4 = vmul.f32 %v415_v3, %v197_v1 }
  0x52   : > { %416 = vlog2.f32 %v200_v4 }
  0x5f   : > { %v417_v5 = vpop.eup %416 }
  0x60   : > { %v202_v7 = vmul.f32 0.6931472, %v417_v5 }
  0x62   : > { %v204_v8 = vadd.f32 %v203_v6, %v202_v7 }
  0x64   : > { %v336_v9 = vmul.f32 -1.442695, %v204_v8 }
  0x66   : > { %418 = vpow2.f32 %v336_v9 }
  0x73   : > { %v419_v10 = vpop.eup %418 }
  0x74   : > { %v208_v11 = vadd.f32 1.0, %v419_v10 }
  0x76   : > { %420 = vrcp.f32 %v208_v11 }
  0x83   : > { %v421_v12 = vpop.eup %420 }
  0x84   : > { %v211_v13 = vmul.f32 1.2, %v421_v12 }
  0x86   : > { %v212_v14 = vadd.f32 -0.1, %v211_v13 }
  0x88   : > { %v213_v15 = vmax.f32 %v212_v14, 0.0 }
  0x8a   : > { %v214_v16 = vmin.f32 %v213_v15, 1.0 }
  0x8c   : > { %215 = vst [vmem:[%s195_s17] sm:$0xff] %v214_v16 }
  0x8d   : > { %489 = shalt.err (!%p486_p3)
}
  0x8e   : > { %s490_s12 = scalar_lea.hbm %s229_s16, 128  ;;  %s494_s29 = scalar_lea.hbm %s743_s2, 256 }
  0x8f   : > { %p491_p5 = scmp.ne.s32.totalorder %s229_s16, %s490_s12  ;;  %p495_p4 = scmp.lt.s32.totalorder %s229_s16, %s743_s2 }
  0x90   : > { %p496_p10 = scmp.lt.s32.totalorder %s494_s29, %s490_s12 }
  0x91   : > { %p492_p7 = pnand %p491_p5, %p666_p0 }
  0x92   : > { %p497_p9 = por %p496_p10, %p495_p4 }
  0x93   : > { %p493_p6 = pneg %p492_p7 }
  0x95   : > { %p498_p1 = pnand %p497_p9, %p493_p6 }
  0x97   : > { %501 = shalt.err (!%p498_p1)
}
  0x98   : > { %347 = dma.vmem_to_hbm [thread:$0]  (%p666_p0), %s232_s19, 128, %s229_s16, %s217_s22  }
  0x99 PF: > { %s243_s6 = sand.u32 1, %s540_s9   ;;  %p754_p8 = scmp.ne.s32.totalorder %s748_s20, 0 }
  0x9a   : > { %p755_p13 = scmp.ge.s32.totalorder %s560_s14, 2  ;;  %s244_s7 = scalar_lea.sflag [#allocation4], %s243_s6 }
  0x9c   : > { %p358_p11 = pnand %p755_p13, %p754_p8 }
  0x9e   : > { %p359_p2 = pneg %p358_p11 }
  0xa0   : > { %535 = dma.done.wait (%p359_p2), %s244_s7, 128  }
  0xa1   : > { %537 = vsyncadd (%p359_p2), %s244_s7, 4294967168  ;;  %s19_s14 = sadd.s32 1, %s560_s14   ;;  %s756_s9 = smov %s544_s10 }
  0xa2   : > { %p16_p12 = scmp.ge.s32.totalorder %s19_s14, 4   ;;  %s757_s10 = smov %s548_s11 }
  0xa3   : > { %s758_s11 = smov %s672_s5  ;;  %s759_s12 = smov %s556_s13 }
  0xa4   : > { %s760_s13 = smov %s762_s25  ;;  %18 = sbr.rel (!%p16_p12) target bundleno = 7 (0x7), region = 79 }
  0xa9   :  { %249 = vsyncpa [#allocation3], 1 }
  0xaa   :  { %251 = vsyncpa [#allocation3 + $0x1], 1 }
  0xab   :  { %252 = vsyncpa [#allocation6], 1 }
  0xac   :  { %254 = vsyncpa [#allocation6 + $0x1], 1 }
  0xad   :  { %255 = vsyncpa [#allocation4], 1 }
  0xae   :  { %257 = vsyncpa [#allocation4 + $0x1], 1 }

</bundles_post_ra>
